<compile_context>
chip_gen: v5e
topology: v5e:2x2
jax: 0.10.0
libtpu: 0.0.40
codegen_flags: <defaults>
</compile_context>

<pallas_src>
import functools
import math

import jax
import jax.numpy as jnp
from jax.experimental import pallas as pl
from jax.experimental.pallas import tpu as pltpu


def _cdiv(a, b):
    return -(-a // b)


def _round_up(a, m):
    return _cdiv(a, m) * m


def attention_encoder_kernel(x_ref, wqkv_ref, bqkv_ref, gamma_ref, beta_ref,
                             o_ref, *, scale, eps, key_dim, value_dim,
                             k_off, v_off):
    bb, s, d = x_ref.shape                       # batch block, seq, input_dim

    # --- fused QKV projection: one tall (BB*S, D) @ (D, F) bf16 matmul, f32 accum ---
    xf = x_ref[...].reshape(bb * s, d)
    qkv = jnp.dot(xf, wqkv_ref[...],
                  preferred_element_type=jnp.float32) + bqkv_ref[...]

    # Segment starts are 128-lane aligned (0 / k_off / v_off) -> cheap, copy-free slices.
    q = qkv[:, 0:key_dim].reshape(bb, s, key_dim)
    k = qkv[:, k_off:k_off + key_dim].reshape(bb, s, key_dim)
    v = qkv[:, v_off:v_off + value_dim].reshape(bb, s, value_dim)

    # --- scaled dot-product scores; contraction on last dims (no explicit transpose) ---
    scores = jnp.einsum('bqd,bkd->bqk', q, k,
                        preferred_element_type=jnp.float32) * scale

    # --- numerically-stable softmax over the key axis (mask=None path) ---
    scores = scores - jnp.max(scores, axis=-1, keepdims=True)
    e = jnp.exp(scores)
    denom = jnp.sum(e, axis=-1, keepdims=True)
    r = pl.reciprocal(denom, approx=True)        # EUP slot (otherwise idle)
    r = r * (2.0 - denom * r)                    # one Newton step -> ~f32 accuracy
    a = e * r

    # --- weighted value sum ---
    y = jnp.einsum('bqk,bkh->bqh', a, v, preferred_element_type=jnp.float32)

    # --- LayerNorm over feature dim (biased variance, eps inside rsqrt) ---
    mu = jnp.mean(y, axis=-1, keepdims=True)
    var = jnp.mean((y - mu) * (y - mu), axis=-1, keepdims=True)
    y = (y - mu) * jax.lax.rsqrt(var + eps)

    # --- mean pooling over seq, then the LayerNorm affine on the pooled (BB, H) block ---
    o_ref[...] = jnp.mean(y, axis=1) * gamma_ref[...] + beta_ref[...]


def _choose_batch_block(B, S, D, F, H, vmem_budget_bytes):
    """Batch block from a conservative VMEM budget; multiple of 8; >=2 grid steps."""
    per_elem = (
        2 * S * D * 2            # x block (bf16), double-buffered
        + S * F * 4              # fused qkv accumulation (f32)
        + 2 * S * D * 4          # q, k slices (f32)
        + S * H * 4              # v slice (f32)
        + 3 * S * S * 4          # scores / exp / probs (f32)
        + 3 * S * H * 4          # y, centered, normalized (f32)
        + 2 * H * 4              # output block (f32), double-buffered
    )
    bb_max = max(1, vmem_budget_bytes // per_elem)
    # >=2 steps when B > 1 so the 'parallel' batch axis shards across v7x's 2 TCs.
    n_steps = max(_cdiv(B, bb_max), 2 if B > 1 else 1)
    bb = _round_up(_cdiv(B, n_steps), 8)         # sublane-dense blocks / stores
    return bb, n_steps


def standard_attention_encoder(x, params, *, vmem_budget_bytes=8 << 20):
    """x: (B, S, D) float32 -> (B, H) float32."""
    B, S, D = x.shape
    gamma, beta = params["gamma"], params["beta"]
    H = gamma.shape[-1]

    # --- fused Wq|Wk|Wv with each segment padded to a 128-lane boundary ---
    seg_k = _round_up(D, 128)
    seg_v = _round_up(H, 128)
    k_off, v_off = seg_k, 2 * seg_k
    F = 2 * seg_k + seg_v

    wqkv = jnp.zeros((D, F), jnp.float32)
    wqkv = wqkv.at[:, :D].set(params["wq"])
    wqkv = wqkv.at[:, k_off:k_off + D].set(params["wk"])
    wqkv = wqkv.at[:, v_off:v_off + H].set(params["wv"])
    bqkv = jnp.zeros((1, F), jnp.float32)
    bqkv = bqkv.at[:, :D].set(params["bq"])
    bqkv = bqkv.at[:, k_off:k_off + D].set(params["bk"])
    bqkv = bqkv.at[:, v_off:v_off + H].set(params["bv"])

    # bf16 operands for the MXU projection (f32 accumulation inside the kernel).
    wqkv = wqkv.astype(jnp.bfloat16)
    x_in = x.astype(jnp.bfloat16)

    # --- batch blocking: VMEM-budgeted BB, padded batch, >=2 grid steps ---
    BB, n_steps = _choose_batch_block(B, S, D, F, H, vmem_budget_bytes)
    B_pad = BB * n_steps
    if B_pad != B:
        # Zero-padded rows are numerically safe (softmax denom = S, LN var=0 -> eps)
        # and are sliced off below.
        x_in = jnp.pad(x_in, ((0, B_pad - B), (0, 0), (0, 0)))

    kernel = functools.partial(
        attention_encoder_kernel,
        scale=1.0 / math.sqrt(D), eps=1e-5,
        key_dim=D, value_dim=H, k_off=k_off, v_off=v_off)

    out = pl.pallas_call(
        kernel,
        out_shape=jax.ShapeDtypeStruct((B_pad, H), jnp.float32),
        grid=(n_steps,),
        in_specs=[
            pl.BlockSpec((BB, S, D), lambda i: (i, 0, 0)),   # x (batch-blocked, bf16)
            pl.BlockSpec((D, F), lambda i: (0, 0)),          # fused Wqkv (resident, bf16)
            pl.BlockSpec((1, F), lambda i: (0, 0)),          # fused bias (f32)
            pl.BlockSpec((1, H), lambda i: (0, 0)),          # gamma
            pl.BlockSpec((1, H), lambda i: (0, 0)),          # beta
        ],
        out_specs=pl.BlockSpec((BB, H), lambda i: (i, 0)),
        compiler_params=pltpu.CompilerParams(
            dimension_semantics=("parallel",),               # shard batch blocks across TCs
            vmem_limit_bytes=32 * 1024 * 1024),              # > v5e 16MiB default, < v7x 64MiB
    )(x_in, wqkv, bqkv, gamma, beta)
    return out[:B]
    # TODO(synk): learned-key/value path (nb_learn_key_val>0) and the MaskedSoftmax
    # mask path are not implemented (module defaults use neither).


def init_params(key, input_dim, hidden_dim):
    """Deterministic parameter init mirroring nn.Linear / nn.LayerNorm shapes."""
    ks = jax.random.split(key, 6)

    def linear(kw, kb, fan_in, fan_out):
        bound = 1.0 / math.sqrt(fan_in)
        w = jax.random.uniform(kw, (fan_in, fan_out), jnp.float32, -bound, bound)
        b = jax.random.uniform(kb, (1, fan_out), jnp.float32, -bound, bound)
        return w, b

    wq, bq = linear(ks[0], ks[1], input_dim, input_dim)   # query_network: Linear(D, key_dim=D)
    wk, bk = linear(ks[2], ks[3], input_dim, input_dim)   # key_network:   Linear(D, key_dim=D)
    wv, bv = linear(ks[4], ks[5], input_dim, hidden_dim)  # value_network: Linear(D, H)
    gamma = jnp.ones((1, hidden_dim), jnp.float32)        # LayerNorm(H) affine
    beta = jnp.zeros((1, hidden_dim), jnp.float32)
    return dict(wq=wq, bq=bq, wk=wk, bk=bk, wv=wv, bv=bv, gamma=gamma, beta=beta)


def reference_forward(x, params):
    """Pure-JAX f32 reference of the PyTorch forward (for a correctness check)."""
    D = x.shape[-1]
    q = x @ params["wq"] + params["bq"]
    k = x @ params["wk"] + params["bk"]
    v = x @ params["wv"] + params["bv"]
    a = jnp.einsum("bqd,bkd->bqk", q, k) / math.sqrt(D)
    a = jax.nn.softmax(a, axis=-1)
    y = jnp.einsum("bqk,bkh->bqh", a, v)
    mu = jnp.mean(y, axis=-1, keepdims=True)
    var = jnp.mean((y - mu) ** 2, axis=-1, keepdims=True)
    y = (y - mu) / jnp.sqrt(var + 1e-5)
    y = y * params["gamma"] + params["beta"]
    return jnp.mean(y, axis=1)


if __name__ == "__main__":
    B, S, D, H = 2, 8, 32, 32   # batch, seq, input_dim, hidden_dim

    key = jax.random.PRNGKey(0)
    kx, kp = jax.random.split(key)
    x = jax.random.normal(kx, (B, S, D), dtype=jnp.float32)
    params = init_params(kp, D, H)

    out = standard_attention_encoder(x, params)
    out = jax.block_until_ready(out)

    ref = reference_forward(x, params)
    assert out.shape == (B, H)
    # bf16 projection operands (f32 accumulation) -> compare against the f32
    # reference with a bf16-appropriate tolerance.
    assert jnp.allclose(out, ref, atol=2e-2, rtol=2e-2)

    print("KERNEL_OK")
</pallas_src>

<mosaic_0001>
module attributes {stable_mosaic.version = 11 : i64} {
  func.func @attention_encoder_kernel(%arg0: i32, %arg1: memref<8x8x32xbf16, #tpu.memory_space<vmem>>, %arg2: memref<32x384xbf16, #tpu.memory_space<vmem>>, %arg3: memref<1x384xf32, #tpu.memory_space<vmem>>, %arg4: memref<1x32xf32, #tpu.memory_space<vmem>>, %arg5: memref<1x32xf32, #tpu.memory_space<vmem>>, %arg6: memref<8x32xf32, #tpu.memory_space<vmem>>) attributes {dimension_semantics = [#tpu.dimension_semantics<parallel>], iteration_bounds = array<i64: 2>, scalar_prefetch = 0 : i64, scratch_operands = 0 : i64, tpu.core_type = #tpu.core_type<tc>, window_params = [{transform_indices = @transform_0, window_bounds = array<i64: 8, 8, 32>}, {pipeline_mode = #tpu.pipeline_mode<synchronous>, transform_indices = @transform_1, window_bounds = array<i64: 32, 384>}, {pipeline_mode = #tpu.pipeline_mode<synchronous>, transform_indices = @transform_2, window_bounds = array<i64: 1, 384>}, {pipeline_mode = #tpu.pipeline_mode<synchronous>, transform_indices = @transform_3, window_bounds = array<i64: 1, 32>}, {pipeline_mode = #tpu.pipeline_mode<synchronous>, transform_indices = @transform_4, window_bounds = array<i64: 1, 32>}, {transform_indices = @transform_5, window_bounds = array<i64: 8, 32>}]} {
    %c0 = arith.constant 0 : index
    %c0_0 = arith.constant 0 : index
    %c0_1 = arith.constant 0 : index
    %0 = vector.load %arg1[%c0, %c0_0, %c0_1] : memref<8x8x32xbf16, #tpu.memory_space<vmem>>, vector<8x8x32xbf16>
    %1 = vector.shape_cast %0 : vector<8x8x32xbf16> to vector<64x32xbf16>
    %c0_2 = arith.constant 0 : index
    %c0_3 = arith.constant 0 : index
    %2 = vector.load %arg2[%c0_2, %c0_3] : memref<32x384xbf16, #tpu.memory_space<vmem>>, vector<32x384xbf16>
    %cst = arith.constant dense<0.000000e+00> : vector<64x384xf32>
    %3 = tpu.matmul %1, %2, %cst {dimension_numbers = #tpu.dot_dimension_numbers<[1], [0], [0], [1], [0, 0, 1, 1], [], []>} : vector<64x32xbf16>, vector<32x384xbf16>, vector<64x384xf32> -> vector<64x384xf32>
    %c0_4 = arith.constant 0 : index
    %c0_5 = arith.constant 0 : index
    %4 = vector.load %arg3[%c0_4, %c0_5] : memref<1x384xf32, #tpu.memory_space<vmem>>, vector<1x384xf32>
    %5 = vector.broadcast %4 : vector<1x384xf32> to vector<64x384xf32>
    %6 = arith.addf %3, %5 : vector<64x384xf32>
    %7 = vector.extract_strided_slice %6 {offsets = [0, 0], sizes = [64, 32], strides = [1, 1]} : vector<64x384xf32> to vector<64x32xf32>
    %8 = vector.shape_cast %7 : vector<64x32xf32> to vector<8x8x32xf32>
    %9 = vector.extract_strided_slice %6 {offsets = [0, 128], sizes = [64, 32], strides = [1, 1]} : vector<64x384xf32> to vector<64x32xf32>
    %10 = vector.shape_cast %9 : vector<64x32xf32> to vector<8x8x32xf32>
    %11 = vector.extract_strided_slice %6 {offsets = [0, 256], sizes = [64, 32], strides = [1, 1]} : vector<64x384xf32> to vector<64x32xf32>
    %12 = vector.shape_cast %11 : vector<64x32xf32> to vector<8x8x32xf32>
    "tpu.trace_start"() <{level = 10 : i32, message = "bqd,bkd->bqk"}> : () -> ()
    %cst_6 = arith.constant dense<0.000000e+00> : vector<8x8x8xf32>
    %13 = tpu.matmul %8, %10, %cst_6 {dimension_numbers = #tpu.dot_dimension_numbers<[2], [2], [1], [1], [0, 0, 0, 1, 1, 1], [0], [0]>} : vector<8x8x32xf32>, vector<8x8x32xf32>, vector<8x8x8xf32> -> vector<8x8x8xf32>
    "tpu.trace_stop"() : () -> ()
    %cst_7 = arith.constant 0.176776692 : f32
    %14 = vector.broadcast %cst_7 : f32 to vector<8x8x8xf32>
    %15 = arith.mulf %13, %14 : vector<8x8x8xf32>
    %cst_8 = arith.constant dense<0xFF800000> : vector<8x8xf32>
    %16 = vector.multi_reduction <maximumf>, %15, %cst_8 [2] : vector<8x8x8xf32> to vector<8x8xf32>
    %17 = vector.shape_cast %16 : vector<8x8xf32> to vector<8x8x1xf32>
    %18 = vector.broadcast %17 : vector<8x8x1xf32> to vector<8x8x8xf32>
    %19 = arith.subf %15, %18 : vector<8x8x8xf32>
    %20 = math.exp %19 : vector<8x8x8xf32>
    %cst_9 = arith.constant dense<0.000000e+00> : vector<8x8xf32>
    %21 = vector.multi_reduction <add>, %20, %cst_9 [2] : vector<8x8x8xf32> to vector<8x8xf32>
    %22 = vector.shape_cast %21 : vector<8x8xf32> to vector<8x8x1xf32>
    %23 = tpu.reciprocal %22 {approx = true} : vector<8x8x1xf32> -> vector<8x8x1xf32>
    %24 = arith.mulf %22, %23 : vector<8x8x1xf32>
    %cst_10 = arith.constant 2.000000e+00 : f32
    %25 = vector.broadcast %cst_10 : f32 to vector<8x8x1xf32>
    %26 = arith.subf %25, %24 : vector<8x8x1xf32>
    %27 = arith.mulf %23, %26 : vector<8x8x1xf32>
    %28 = vector.broadcast %27 : vector<8x8x1xf32> to vector<8x8x8xf32>
    %29 = arith.mulf %20, %28 : vector<8x8x8xf32>
    "tpu.trace_start"() <{level = 10 : i32, message = "bqk,bkh->bqh"}> : () -> ()
    %cst_11 = arith.constant dense<0.000000e+00> : vector<8x8x32xf32>
    %30 = tpu.matmul %29, %12, %cst_11 {dimension_numbers = #tpu.dot_dimension_numbers<[2], [1], [1], [2], [0, 0, 0, 1, 1, 2], [0], [0]>} : vector<8x8x8xf32>, vector<8x8x32xf32>, vector<8x8x32xf32> -> vector<8x8x32xf32>
    "tpu.trace_stop"() : () -> ()
    %cst_12 = arith.constant dense<0.000000e+00> : vector<8x8xf32>
    %31 = vector.multi_reduction <add>, %30, %cst_12 [2] : vector<8x8x32xf32> to vector<8x8xf32>
    %32 = vector.shape_cast %31 : vector<8x8xf32> to vector<8x8x1xf32>
    %cst_13 = arith.constant 3.200000e+01 : f32
    %33 = vector.broadcast %cst_13 : f32 to vector<8x8x1xf32>
    %34 = arith.divf %32, %33 : vector<8x8x1xf32>
    %35 = vector.broadcast %34 : vector<8x8x1xf32> to vector<8x8x32xf32>
    %36 = arith.subf %30, %35 : vector<8x8x32xf32>
    %37 = vector.broadcast %34 : vector<8x8x1xf32> to vector<8x8x32xf32>
    %38 = arith.subf %30, %37 : vector<8x8x32xf32>
    %39 = arith.mulf %36, %38 : vector<8x8x32xf32>
    %cst_14 = arith.constant dense<0.000000e+00> : vector<8x8xf32>
    %40 = vector.multi_reduction <add>, %39, %cst_14 [2] : vector<8x8x32xf32> to vector<8x8xf32>
    %41 = vector.shape_cast %40 : vector<8x8xf32> to vector<8x8x1xf32>
    %cst_15 = arith.constant 3.200000e+01 : f32
    %42 = vector.broadcast %cst_15 : f32 to vector<8x8x1xf32>
    %43 = arith.divf %41, %42 : vector<8x8x1xf32>
    %44 = vector.broadcast %34 : vector<8x8x1xf32> to vector<8x8x32xf32>
    %45 = arith.subf %30, %44 : vector<8x8x32xf32>
    %cst_16 = arith.constant 9.99999974E-6 : f32
    %46 = vector.broadcast %cst_16 : f32 to vector<8x8x1xf32>
    %47 = arith.addf %43, %46 : vector<8x8x1xf32>
    %48 = math.rsqrt %47 : vector<8x8x1xf32>
    %49 = vector.broadcast %48 : vector<8x8x1xf32> to vector<8x8x32xf32>
    %50 = arith.mulf %45, %49 : vector<8x8x32xf32>
    %cst_17 = arith.constant dense<0.000000e+00> : vector<8x32xf32>
    %51 = vector.multi_reduction <add>, %50, %cst_17 [1] : vector<8x8x32xf32> to vector<8x32xf32>
    %cst_18 = arith.constant 8.000000e+00 : f32
    %52 = vector.broadcast %cst_18 : f32 to vector<8x32xf32>
    %53 = arith.divf %51, %52 : vector<8x32xf32>
    %c0_19 = arith.constant 0 : index
    %c0_20 = arith.constant 0 : index
    %54 = vector.load %arg4[%c0_19, %c0_20] : memref<1x32xf32, #tpu.memory_space<vmem>>, vector<1x32xf32>
    %55 = vector.broadcast %54 : vector<1x32xf32> to vector<8x32xf32>
    %56 = arith.mulf %53, %55 : vector<8x32xf32>
    %c0_21 = arith.constant 0 : index
    %c0_22 = arith.constant 0 : index
    %57 = vector.load %arg5[%c0_21, %c0_22] : memref<1x32xf32, #tpu.memory_space<vmem>>, vector<1x32xf32>
    %58 = vector.broadcast %57 : vector<1x32xf32> to vector<8x32xf32>
    %59 = arith.addf %56, %58 : vector<8x32xf32>
    %c0_23 = arith.constant 0 : index
    %c0_24 = arith.constant 0 : index
    %60 = vector.load %arg6[%c0_23, %c0_24] : memref<8x32xf32, #tpu.memory_space<vmem>>, vector<8x32xf32>
    tpu.vector_store %arg6[%c0_23, %c0_24], %59 {strides = array<i32>} : memref<8x32xf32, #tpu.memory_space<vmem>>, vector<8x32xf32>,
    return
  }
  func.func @transform_0(%arg0: i32) -> (i32, i32, i32) {
    %c0_i32 = arith.constant 0 : i32
    %c0_i32_0 = arith.constant 0 : i32
    %c0_i32_1 = arith.constant 0 : i32
    return %arg0, %c0_i32, %c0_i32_0 : i32, i32, i32
  }
  func.func @transform_1(%arg0: i32) -> (i32, i32) {
    %c0_i32 = arith.constant 0 : i32
    %c0_i32_0 = arith.constant 0 : i32
    %c0_i32_1 = arith.constant 0 : i32
    return %c0_i32, %c0_i32_0 : i32, i32
  }
  func.func @transform_2(%arg0: i32) -> (i32, i32) {
    %c0_i32 = arith.constant 0 : i32
    %c0_i32_0 = arith.constant 0 : i32
    %c0_i32_1 = arith.constant 0 : i32
    return %c0_i32, %c0_i32_0 : i32, i32
  }
  func.func @transform_3(%arg0: i32) -> (i32, i32) {
    %c0_i32 = arith.constant 0 : i32
    %c0_i32_0 = arith.constant 0 : i32
    %c0_i32_1 = arith.constant 0 : i32
    return %c0_i32, %c0_i32_0 : i32, i32
  }
  func.func @transform_4(%arg0: i32) -> (i32, i32) {
    %c0_i32 = arith.constant 0 : i32
    %c0_i32_0 = arith.constant 0 : i32
    %c0_i32_1 = arith.constant 0 : i32
    return %c0_i32, %c0_i32_0 : i32, i32
  }
  func.func @transform_5(%arg0: i32) -> (i32, i32) {
    %c0_i32 = arith.constant 0 : i32
    %c0_i32_0 = arith.constant 0 : i32
    return %arg0, %c0_i32 : i32, i32
  }
}

</mosaic_0001>

<bundles_post_ra>
// kernel: tpu_custom_call.1
= control target key start
LH: loop header
LB: loop body
LE: loop exit
PB: predicated region body
PF: predicated region fallthrough
CT: control target
= control target key end

     0   :  { %10 = vsyncpa [#allocation3], 0  ;;  %s2210_s0 = inlined_call_operand.hbm [shape: bf16[16,8,32], index: 0, kind: input, shape index: {}]   ;;  %s2211_s1 = inlined_call_operand.hbm [shape: bf16[32,384], index: 1, kind: input, shape index: {}]   ;;  %s2212_s2 = inlined_call_operand.hbm [shape: f32[1,384], index: 2, kind: input, shape index: {}]   ;;  %s2213_s3 = inlined_call_operand.vmem [shape: f32[1,32], index: 3, kind: input, shape index: {}]   ;;  %s2214_s4 = inlined_call_operand.vmem [shape: f32[1,32], index: 4, kind: input, shape index: {}]   ;;  %s2215_s5 = inlined_call_operand.hbm [shape: f32[16,32], index: 5, kind: output, shape index: {}]  }
   0x1   :  { %12 = vsyncpa [#allocation3 + $0x1], 0 }
   0x2   :  { %13 = vsyncpa [#allocation6], 0 }
   0x3   :  { %14 = vsyncpa [#allocation4], 0 }
   0x4   :  { %16 = vsyncpa [#allocation4 + $0x1], 0  ;;  %s1812_s18 = smov 0   ;;  %s1814_s19 = smov 0  }
   0x5   :  { %s1816_s20 = smov 0   ;;  %s1818_s21 = smov 0  }
   0x6 LB: > { %s1833_s22 = sadd.s32 4294967295, %s1772_s21   ;;  %s1381_s23 = sadd.s32 4294967294, %s1772_s21   ;;  %s1772_s21 = sphi %s1818_s21, %s2229_s21   ;;  %s1768_s20 = sphi %s1816_s20, %s2228_s20   ;;  %s1764_s19 = sphi %s1814_s19, %s2227_s19   ;;  %s1760_s18 = sphi %s1812_s18, %s2226_s18  }
   0x7   : > { %p42_p0 = scmp.ne.s32.totalorder %s1764_s19, %s1760_s18  ;;  %p43_p1 = scmp.eq.s32.totalorder %s1833_s22, 0 }
   0x8   : > { %p150_p2 = scmp.eq.s32.totalorder %s1833_s22, 1  ;;  %p156_p3 = scmp.eq.s32.totalorder %s1381_s23, 1 }
   0x9   : > { %p1842_p4 = por %p43_p1, %p42_p0  ;;  %p1382_p5 = scmp.ge.s32.totalorder %s1772_s21, 1 }
   0xa   : > { %p1847_p6 = por %p156_p3, %p42_p0  ;;  %p163_p7 = scmp.lt.s32.totalorder %s1772_s21, 3 }
   0xb   : > { %s174_s28 = sshll.u32 %s2211_s1, 4  ;;  %s1774_s30 = smov [#allocation5]   ;;  %s175_s28 = int_to_ptr.hbm [resolvable:$true] %s174_s28 }
   0xc   : > { %p1855_p8 = pnand %p1382_p5, %p163_p7  ;;  %s176_s6 = sshll.u32 %s1774_s30, 4  ;;  %s177_s6 = int_to_ptr.vmem [resolvable:$true] %s176_s6 }
   0xd   : > { %s189_s9 = sshll.u32 %s2212_s2, 4  ;;  %s1775_s10 = smov 192   ;;  %s190_s9 = int_to_ptr.hbm [resolvable:$true] %s189_s9 }
   0xe   : > { %p1497_p9 = pneg %p1855_p8  ;;  %s1776_s11 = smov 12  }
   0xf   : > { %s1777_s12 = smov [#allocation7]   ;;  %s1868_s14 = sadd.s32 1, %s1772_s21  }
  0x10   : > { %p1498_p10 = pnand %p1497_p9, %p43_p1  ;;  %s191_s13 = sshll.u32 %s1777_s12, 4  ;;  %s192_s13 = int_to_ptr.vmem [resolvable:$true] %s191_s13 }
  0x11   : > { %s29_s15 = sadd.s32 1, %s1768_s20  ;;  %s26_s16 = ssub.s32 %s1772_s21, %s1868_s14 }
  0x12   : > { %1500 = dma.hbm_to_vmem [thread:$0]  (!%p1498_p10), %s175_s28, 768, %s177_s6, [#allocation6], %s1775_s10, %s1775_s10, %s1776_s11  }
  0x13   : > { %1503 = dma.hbm_to_vmem [thread:$0]  (!%p1498_p10), %s190_s9, 48, %s192_s13, [#allocation6]  }
  0x14   : > { %p36_p12 = scmp.ne.s32.totalorder %s1768_s20, %s1764_s19  ;;  %p27_p13 = scmp.eq.s32.totalorder %s26_s16, 0 }
  0x15   : > { %p37_p0 = scmp.eq.s32.totalorder %s1772_s21, 0  ;;  %p1514_p5 = scmp.lt.s32.totalorder %s1772_s21, 2 }
  0x16   : > { %p1878_p3 = por %p150_p2, %p36_p12  ;;  %s208_s26 = sand.u32 1, %s1768_s20  }
  0x17   : > { %s1884_s23 = scalar_select %p27_p13, %s1768_s20, %s29_s15  }
  0x18   : > { %p38_p7 = por %p37_p0, %p36_p12  ;;  %s1386_s27 = sshll.u32 %s208_s26, 5 }
  0x19   : > { %s1474_s28 = sshll.u32 %s1772_s21, 5  ;;  %s212_s8 = scalar_lea.vmem [#allocation2], %s1386_s27 }
  0x1a   : > { %s217_s7 = scalar_lea.hbm %s2210_s0, %s1474_s28  ;;  %s220_s9 = sshll.u32 %s212_s8, 4  ;;  %s221_s9 = int_to_ptr.vmem [resolvable:$true] %s220_s9 }
  0x1b   : > { %s218_s10 = sshll.u32 %s217_s7, 4  ;;  %p1891_p2 = pnand %p1514_p5, %p38_p7  ;;  %s219_s10 = int_to_ptr.hbm [resolvable:$true] %s218_s10 }
  0x1c   : > { %s209_s12 = scalar_lea.sflag [#allocation3], %s208_s26  ;;  %s1672_s13 = sshra.s32 %s219_s10, 4  ;;  %s1673_s13 = int_to_ptr.hbm [resolvable:$true] %s1672_s13 }
  0x1d   : > { %s1674_s15 = scalar_lea.hbm %s1673_s13, 32  ;;  %p1676_p10 = pneg %p1891_p2 }
  0x1e   : > { %p1675_p9 = scmp.ne.s32.totalorder %s1673_s13, %s1674_s15  ;;  %s1679_s28 = scalar_lea.hbm %s2210_s0, 64 }
  0x1f   : > { %p1680_p0 = scmp.lt.s32.totalorder %s1673_s13, %s2210_s0  ;;  %p1681_p5 = scmp.lt.s32.totalorder %s1679_s28, %s1674_s15 }
  0x20   : > { %p1677_p12 = pnand %p1676_p10, %p1675_p9 }
  0x21   : > { %p1682_p7 = por %p1681_p5, %p1680_p0 }
  0x22   : > { %p1678_p13 = pneg %p1677_p12 }
  0x24   : > { %p1683_p11 = pnand %p1682_p7, %p1678_p13 }
  0x26   : > { %1686 = shalt.err (!%p1683_p11)
}
  0x27   : > { %s1778_s26 = smov 64   ;;  %s1779_s7 = smov 4  }
  0x28   : > { %1507 = dma.hbm_to_vmem [thread:$0]  (!%p1891_p2), %s219_s10, 512, %s221_s9, %s209_s12, %s1778_s26, %s1778_s26, %s1779_s7  }
  0x29   : > { %232 = sbr.rel (%p1855_p8) target bundleno = 1062 (0x426), region = 40  ;;  %s1908_s8 = sand.u32 (!%p1855_p8), 1, %s1764_s19  }
  0x2a   : > { %s1390_s16 = sshll.u32 (!%p1855_p8), %s1908_s8, 5  ;;  %s235_s13 = scalar_lea.sflag (!%p1855_p8), [#allocation3], %s1908_s8 }
  0x2b   : > { %s1912_s15 = scalar_lea.vmem (!%p1855_p8), [#allocation2], %s1390_s16 }
  0x2e   : > { %1747 = dma.done.wait (%p1842_p4), %s235_s13, 512  }
  0x2f   : > { %1749 = vsyncadd (%p1842_p4), %s235_s13, 4294966784 }
  0x30   : > { %1751 = dma.done.wait (%p43_p1), [#allocation6], 816  }
  0x31   : > { %1753 = vsyncadd (%p43_p1), [#allocation6], 4294966480  ;;  %v1424_v0 = vld [vmem:[#allocation5 + $0x18] sm:$0xf]  ;;  %v1483_v1 = vld [vmem:[#allocation5 + $0x20] sm:$0xf0] }
  0x32   : > { %v1482_v2 = vld [vmem:[#allocation5 + $0x1c] sm:$0xf]  ;;  %v1425_v3 = vor.u32 %v1483_v1, %v1424_v0  ;;  %v1426_v4 = vld [vmem:[#allocation5 + $0x24] sm:$0xf0]  ;;  %v1412_v5 = vld [vmem:[#allocation5] sm:$0xf] }
  0x33   : > { %v1480_v6 = vld [vmem:[#allocation5 + $0x8] sm:$0xf0]  ;;  %v1429_v7 = vor.u32 %v1482_v2, %v1426_v4  ;;  %v1479_v8 = vld [vmem:[#allocation5 + $0x4] sm:$0xf]  ;;  %v1414_v9 = vld [vmem:[#allocation5 + $0xc] sm:$0xf0] }
  0x34   : > { %373 = vmatpush.bf16.msra.mxu0 %v1425_v3  ;;  %v1413_v10 = vor.u32 %v1480_v6, %v1412_v5  ;;  %v1417_v11 = vor.u32 %v1479_v8, %v1414_v9  ;;  %v1923_v12 = vld [vmem:[%s1912_s15] sm:$0xff]  ;;  %vm354_vm0 = vcmask 261120   ;;  %v1930_v13 = vld [vmem:[%s1912_s15 + $0x8] sm:$0xff]  ;;  %v1937_v14 = vld [vmem:[%s1912_s15 + $0x10] sm:$0xff]  ;;  %vm670_vm1 = vcmask 64512   ;;  %s1393_s11 = sshll.u32 %s1908_s8, 3 }
  0x35   : > { %402 = vmatpush.bf16.msra.mxu1 %v1429_v7  ;;  %v1944_v15 = vld [vmem:[%s1912_s15 + $0x18] sm:$0xff]  ;;  %v1950_v16 = vld [vmem:[#allocation7] sm:$0x7]  ;;  %v1432_v63 = vld [vmem:[#allocation5 + $0x20] sm:$0xf]  ;;  %s1471_s12 = sshll.u32 %s1833_s22, 3 }
  0x36   : > { %v297_v17 = vperm.slane %v1950_v16, 1  ;;  %v296_v18 = vperm.slane %v1950_v16, 0  ;;  %v1484_v0 = vld [vmem:[#allocation5 + $0x28] sm:$0xf0]  ;;  %v1420_v1 = vld [vmem:[#allocation5 + $0x8] sm:$0xf]  ;;  %s1287_s30 = scalar_lea.hbm %s2215_s5, %s1471_s12 }
  0x37   : > { %v1433_v2 = vor.u32 %v1484_v0, %v1432_v63  ;;  %v1481_v3 = vld [vmem:[#allocation5 + $0x10] sm:$0xf0]  ;;  %s275_s22 = scalar_lea.vmem [#allocation8], %s1393_s11  ;;  %s1291_s26 = sshll.u32 %s1287_s30, 4  ;;  %s1292_s26 = int_to_ptr.hbm [resolvable:$true] %s1291_s26 }
  0x38   : > { %374 = vmatpush.bf16.msra.mxu0 %v1413_v10  ;;  %v1421_v4 = vor.u32 %v1481_v3, %v1420_v1  ;;  %s1289_s6 = sshll.u32 %s275_s22, 4  ;;  %s1277_s7 = scalar_lea.sflag [#allocation4], %s1908_s8  ;;  %s1290_s6 = int_to_ptr.vmem [resolvable:$true] %s1289_s6 }
  0x39   : > { %403 = vmatpush.bf16.msra.mxu1 %v1417_v11  ;;  %431 = vmatpush.bf16.msra.mxu2 %v1433_v2  ;;  %s1716_s16 = sshra.s32 %s1292_s26, 4  ;;  %s1722_s29 = scalar_lea.hbm %s2215_s5, 16  ;;  %s1717_s16 = int_to_ptr.hbm [resolvable:$true] %s1716_s16 }
  0x3a   : > { %s1718_s13 = scalar_lea.hbm %s1717_s16, 8  ;;  %p1723_p11 = scmp.lt.s32.totalorder %s1717_s16, %s2215_s5 }
  0x3b   : > { %1434 = vmatmul.msk.bf16.vlgmr.msra.gmra.mxu0 %vm354_vm0, %v1923_v12  ;;  %p1719_p1 = scmp.ne.s32.totalorder %s1717_s16, %s1718_s13  ;;  %p1724_p2 = scmp.lt.s32.totalorder %s1722_s29, %s1718_s13 }
  0x3c   : > { %1438 = vmatmul.msk.bf16.vlgmr.msra.gmra.mxu1 %vm354_vm0, %v1923_v12 }
  0x3d   : > { %432 = vmatpush.bf16.msra.mxu2 %v1421_v4  ;;  %p1720_p4 = pnand %p1719_p1, %p1878_p3  ;;  %p1725_p9 = por %p1724_p2, %p1723_p11 }
  0x3f   : > { %p1721_p8 = pneg %p1720_p4 }
  0x40   : > { %1442 = vmatmul.msk.bf16.vlgmr.msra.gmra.mxu2 %vm354_vm0, %v1923_v12 }
  0x41   : > { %p1726_p10 = pnand %p1725_p9, %p1721_p8 }
  0x4b   : > { %1435 = vmatmul.msk.bf16.gmra.mxu0 %vm354_vm0, %v1930_v13 }
  0x4c   : > { %1439 = vmatmul.msk.bf16.gmra.mxu1 %vm354_vm0, %v1930_v13 }
  0x50   : > { %1443 = vmatmul.msk.bf16.gmra.mxu2 %vm354_vm0, %v1930_v13 }
  0x5b   : > { %1436 = vmatmul.msk.bf16.gmra.mxu0 %vm354_vm0, %v1937_v14 }
  0x5c   : > { %1440 = vmatmul.msk.bf16.gmra.mxu1 %vm354_vm0, %v1937_v14 }
  0x60   : > { %1444 = vmatmul.msk.bf16.gmra.mxu2 %vm354_vm0, %v1937_v14 }
  0x6b   : > { %1437 = vmatmul.msk.bf16.gmra.mxu0 %vm354_vm0, %v1944_v15 }
  0x6c   : > { %1441 = vmatmul.msk.bf16.gmra.mxu1 %vm354_vm0, %v1944_v15 }
  0x70   : > { %1445 = vmatmul.msk.bf16.gmra.mxu2 %vm354_vm0, %v1944_v15 }
  0xb8   : > { %v376_v19 = vpop.f32.mrf.mxu0 }
  0xb9   : > { %v405_v20 = vpop.f32.mrf.mxu1  ;;  %v377_v22 = vadd.f32 %v376_v19, %v296_v18 }
  0xba   : > { %v406_v21 = vadd.f32 %v405_v20, %v297_v17 }
  0xbc   : > { %1446 = vmatpush.xpose.msk.msra.mxu3 %vm354_vm0, %v406_v21 }
  0xbf   : > { %1447 = vmatmul.msk.f32.vlgmr.msra.gmra.mxu3 %vm354_vm0, %v377_v22 }
  0xc0   : > { %v378_v23 = vpop.f32.mrf.mxu0 }
  0xc1   : > { %v407_v24 = vpop.f32.mrf.mxu1  ;;  %v379_v26 = vadd.f32 %v378_v23, %v296_v18 }
  0xc2   : > { %v408_v25 = vadd.f32 %v407_v24, %v297_v17 }
  0xc4   : > { %1448 = vmatpush.xpose.msk.msrb.mxu3 %vm354_vm0, %v408_v25 }
  0xc7   : > { %1449 = vmatmul.msk.f32.vlgmr.msrb.gmra.mxu3 %vm354_vm0, %v379_v26 }
  0xc8   : > { %v381_v27 = vpop.f32.mrf.mxu0 }
  0xc9   : > { %v410_v28 = vpop.f32.mrf.mxu1  ;;  %v382_v30 = vadd.f32 %v381_v27, %v296_v18 }
  0xca   : > { %v411_v29 = vadd.f32 %v410_v28, %v297_v17 }
  0xcc   : > { %1450 = vmatpush.xpose.msk.msra.mxu3 %vm354_vm0, %v411_v29 }
  0xcf   : > { %1451 = vmatmul.msk.f32.vlgmr.msra.gmra.mxu3 %vm354_vm0, %v382_v30 }
  0xd0   : > { %v383_v31 = vpop.f32.mrf.mxu0 }
  0xd1   : > { %v412_v32 = vpop.f32.mrf.mxu1  ;;  %v384_v34 = vadd.f32 %v383_v31, %v296_v18 }
  0xd2   : > { %v413_v33 = vadd.f32 %v412_v32, %v297_v17 }
  0xd4   : > { %1452 = vmatpush.xpose.msk.msrb.mxu3 %vm354_vm0, %v413_v33 }
  0xd7   : > { %1453 = vmatmul.msk.f32.vlgmr.msrb.gmra.mxu3 %vm354_vm0, %v384_v34 }
  0xd8   : > { %v386_v35 = vpop.f32.mrf.mxu0 }
  0xd9   : > { %v415_v36 = vpop.f32.mrf.mxu1  ;;  %v387_v38 = vadd.f32 %v386_v35, %v296_v18 }
  0xda   : > { %v416_v37 = vadd.f32 %v415_v36, %v297_v17 }
  0xdc   : > { %1454 = vmatpush.xpose.msk.msra.mxu3 %vm354_vm0, %v416_v37 }
  0xdf   : > { %1455 = vmatmul.msk.f32.vlgmr.msra.gmra.mxu3 %vm354_vm0, %v387_v38 }
  0xe0   : > { %v388_v39 = vpop.f32.mrf.mxu0 }
  0xe1   : > { %v417_v40 = vpop.f32.mrf.mxu1  ;;  %v389_v42 = vadd.f32 %v388_v39, %v296_v18 }
  0xe2   : > { %v418_v41 = vadd.f32 %v417_v40, %v297_v17 }
  0xe4   : > { %1456 = vmatpush.xpose.msk.msrb.mxu3 %vm354_vm0, %v418_v41 }
  0xe7   : > { %1457 = vmatmul.msk.f32.vlgmr.msrb.gmra.mxu3 %vm354_vm0, %v389_v42 }
  0xe8   : > { %v391_v43 = vpop.f32.mrf.mxu0 }
  0xe9   : > { %v420_v44 = vpop.f32.mrf.mxu1  ;;  %v392_v46 = vadd.f32 %v391_v43, %v296_v18 }
  0xea   : > { %v421_v45 = vadd.f32 %v420_v44, %v297_v17 }
  0xec   : > { %1458 = vmatpush.xpose.msk.msra.mxu3 %vm354_vm0, %v421_v45 }
  0xef   : > { %1459 = vmatmul.msk.f32.vlgmr.msra.gmra.mxu3 %vm354_vm0, %v392_v46  ;;  %v2007_v46 = vperm.slane %v1950_v16, 2 }
  0xf0   : > { %v393_v48 = vpop.f32.mrf.mxu0 }
  0xf1   : > { %v422_v47 = vpop.f32.mrf.mxu1  ;;  %v394_v50 = vadd.f32 %v393_v48, %v296_v18 }
  0xf2   : > { %v423_v49 = vadd.f32 %v422_v47, %v297_v17 }
  0xf4   : > { %1460 = vmatpush.xpose.msk.msrb.mxu3 %vm354_vm0, %v423_v49  ;;  %v434_v49 = vpop.f32.mrf.mxu2 }
  0xf7   : > { %1461 = vmatmul.msk.f32.vlgmr.msrb.gmra.mxu3 %vm354_vm0, %v394_v50 }
 0x142   : > { %v477_v51 = vpop.f32.mrf.mxu3 }
 0x143   : > { %v662_v52 = vmul.f32 0.17677669, %v477_v51 }
 0x145   : > { %v671_v53 = vsel %vm670_vm1, %v662_v52, -inf }
 0x146   : > { %672 = vmax.xlane.f32.xlu0 %v671_v53 }
 0x14a   : > { %v503_v54 = vpop.f32.mrf.mxu3 }
 0x14b   : > { %v663_v55 = vmul.f32 0.17677669, %v503_v54 }
 0x14d   : > { %v674_v56 = vsel %vm670_vm1, %v663_v55, -inf }
 0x14e   : > { %675 = vmax.xlane.f32.xlu1 %v674_v56  ;;  %v436_v56 = vpop.f32.mrf.mxu2 }
 0x152   : > { %v529_v57 = vpop.f32.mrf.mxu3 }
 0x153   : > { %v664_v58 = vmul.f32 0.17677669, %v529_v57 }
 0x155   : > { %v677_v59 = vsel %vm670_vm1, %v664_v58, -inf }
 0x156   : > { %678 = vmax.xlane.f32.xlu1 %v677_v59 }
 0x15a   : > { %v555_v60 = vpop.f32.mrf.mxu3 }
 0x15b   : > { %v665_v61 = vmul.f32 0.17677669, %v555_v60  ;;  %v439_v60 = vpop.f32.mrf.mxu2 }
 0x15d   : > { %v680_v62 = vsel %vm670_vm1, %v665_v61, -inf }
 0x15e   : > { %681 = vmax.xlane.f32.xlu0 %v680_v62  ;;  %v440_v62 = vadd.f32 %v439_v60, %v2007_v46 }
 0x160   : > { %847 = vmatpush.msrb.mxu1 %v440_v62 }
 0x162   : > { %v581_v5 = vpop.f32.mrf.mxu3 }
 0x163   : > { %v666_v6 = vmul.f32 0.17677669, %v581_v5  ;;  %v441_v0 = vpop.f32.mrf.mxu2 }
 0x164   : > { %v442_v1 = vadd.f32 %v441_v0, %v2007_v46 }
 0x165   : > { %v683_v7 = vsel %vm670_vm1, %v666_v6, -inf }
 0x166   : > { %684 = vmax.xlane.f32.xlu2 %v683_v7  ;;  %870 = vmatpush.msrb.mxu2 %v442_v1 }
 0x16a   : > { %v607_v8 = vpop.f32.mrf.mxu3 }
 0x16b   : > { %v667_v9 = vmul.f32 0.17677669, %v607_v8  ;;  %v444_v3 = vpop.f32.mrf.mxu2 }
 0x16d   : > { %v686_v10 = vsel %vm670_vm1, %v667_v9, -inf }
 0x16e   : > { %687 = vmax.xlane.f32.xlu0 %v686_v10  ;;  %v445_v10 = vadd.f32 %v444_v3, %v2007_v46 }
 0x172   : > { %v633_v11 = vpop.f32.mrf.mxu3 }
 0x173   : > { %v668_v17 = vmul.f32 0.17677669, %v633_v11 }
 0x175   : > { %v689_v18 = vsel %vm670_vm1, %v668_v17, -inf }
 0x176   : > { %690 = vmax.xlane.f32.xlu1 %v689_v18 }
 0x17a   : > { %v659_v19 = vpop.f32.mrf.mxu3 }
 0x17b   : > { %v669_v20 = vmul.f32 0.17677669, %v659_v19 }
 0x17d   : > { %v692_v21 = vsel %vm670_vm1, %v669_v20, -inf }
 0x17e   : > { %693 = vmax.xlane.f32.xlu2 %v692_v21 }
 0x1b9   : > { %v673_v12 = vpop.xlane.xlu0 %672 }
 0x1ba   : > { %v695_v22 = vsub.f32 %v662_v52, %v673_v12  ;;  %v435_v52 = vadd.f32 %v434_v49, %v2007_v46 }
 0x1bc   : > { %v703_v23 = vmul.f32 1.442695, %v695_v22  ;;  %801 = vmatpush.msra.mxu3 %v435_v52 }
 0x1be   : > { %1560 = vpow2.f32 %v703_v23  ;;  %893 = vmatpush.msrb.mxu3 %v445_v10  ;;  %v1780_v10 = vmov 32.0  }
 0x1c1   : > { %v676_v24 = vpop.xlane.xlu1 %675 }
 0x1c2   : > { %v696_v25 = vsub.f32 %v663_v55, %v676_v24 }
 0x1c4   : > { %v1986_v26 = vpop.eup %1560  ;;  %v705_v13 = vmul.f32 1.442695, %v696_v25 }
 0x1c5   : > { %v719_v27 = vsel %vm670_vm1, %v1986_v26, 0.0 }
 0x1c6   : > { %1562 = vpow2.f32 %v705_v13  ;;  %720 = vadd.xlane.f32.xlu2 %v719_v27 }
 0x1c9   : > { %v679_v28 = vpop.xlane.xlu1 %678 }
 0x1ca   : > { %v697_v29 = vsub.f32 %v664_v58, %v679_v28  ;;  %v437_v58 = vadd.f32 %v436_v56, %v2007_v46 }
 0x1cc   : > { %v1990_v14 = vpop.eup %1562  ;;  %v707_v30 = vmul.f32 1.442695, %v697_v29  ;;  %824 = vmatpush.msrb.mxu0 %v437_v58 }
 0x1cd   : > { %v722_v15 = vsel %vm670_vm1, %v1990_v14, 0.0 }
 0x1ce   : > { %1564 = vpow2.f32 %v707_v30  ;;  %723 = vadd.xlane.f32.xlu1 %v722_v15 }
 0x1d1   : > { %v682_v31 = vpop.xlane.xlu0 %681 }
 0x1d2   : > { %v698_v32 = vsub.f32 %v665_v61, %v682_v31 }
 0x1d4   : > { %v1994_v33 = vpop.eup %1564  ;;  %v709_v34 = vmul.f32 1.442695, %v698_v32 }
 0x1d5   : > { %v725_v35 = vsel %vm670_vm1, %v1994_v33, 0.0 }
 0x1d6   : > { %1566 = vpow2.f32 %v709_v34  ;;  %726 = vadd.xlane.f32.xlu2 %v725_v35 }
 0x1d9   : > { %v685_v36 = vpop.xlane.xlu2 %684 }
 0x1da   : > { %v699_v37 = vsub.f32 %v666_v6, %v685_v36 }
 0x1dc   : > { %v1998_v38 = vpop.eup %1566  ;;  %v711_v39 = vmul.f32 1.442695, %v699_v37 }
 0x1dd   : > { %v728_v40 = vsel %vm670_vm1, %v1998_v38, 0.0 }
 0x1de   : > { %1568 = vpow2.f32 %v711_v39  ;;  %729 = vadd.xlane.f32.xlu0 %v728_v40 }
 0x1e1   : > { %v688_v41 = vpop.xlane.xlu0 %687 }
 0x1e2   : > { %v700_v42 = vsub.f32 %v667_v9, %v688_v41  ;;  %v446_v9 = vpop.f32.mrf.mxu2 }
 0x1e3   : > { %v447_v11 = vadd.f32 %v446_v9, %v2007_v46 }
 0x1e4   : > { %v2002_v43 = vpop.eup %1568  ;;  %v713_v44 = vmul.f32 1.442695, %v700_v42 }
 0x1e5   : > { %v731_v45 = vsel %vm670_vm1, %v2002_v43, 0.0  ;;  %916 = vmatpush.msra.mxu0 %v447_v11 }
 0x1e6   : > { %1570 = vpow2.f32 %v713_v44  ;;  %732 = vadd.xlane.f32.xlu0 %v731_v45 }
 0x1e9   : > { %v691_v47 = vpop.xlane.xlu1 %690 }
 0x1ea   : > { %v701_v48 = vsub.f32 %v668_v17, %v691_v47  ;;  %v449_v22 = vpop.f32.mrf.mxu2 }
 0x1eb   : > { %v450_v29 = vadd.f32 %v449_v22, %v2007_v46 }
 0x1ec   : > { %v2009_v50 = vpop.eup %1570  ;;  %v715_v51 = vmul.f32 1.442695, %v701_v48 }
 0x1ed   : > { %v734_v53 = vsel %vm670_vm1, %v2009_v50, 0.0  ;;  %939 = vmatpush.msra.mxu1 %v450_v29 }
 0x1ee   : > { %1572 = vpow2.f32 %v715_v51  ;;  %735 = vadd.xlane.f32.xlu2 %v734_v53 }
 0x1f1   : > { %v694_v54 = vpop.xlane.xlu2 %693 }
 0x1f2   : > { %v702_v55 = vsub.f32 %v669_v20, %v694_v54  ;;  %v451_v28 = vpop.f32.mrf.mxu2 }
 0x1f3   : > { %v452_v30 = vadd.f32 %v451_v28, %v2007_v46 }
 0x1f4   : > { %v2014_v57 = vpop.eup %1572  ;;  %v717_v16 = vmul.f32 1.442695, %v702_v55 }
 0x1f5   : > { %v737_v59 = vsel %vm670_vm1, %v2014_v57, 0.0  ;;  %962 = vmatpush.msra.mxu2 %v452_v30 }
 0x1f6   : > { %1574 = vpow2.f32 %v717_v16  ;;  %738 = vadd.xlane.f32.xlu0 %v737_v59 }
 0x1fc   : > { %v2019_v61 = vpop.eup %1574 }
 0x1fd   : > { %v740_v63 = vsel %vm670_vm1, %v2019_v61, 0.0 }
 0x1fe   : > { %741 = vadd.xlane.f32.xlu1 %v740_v63 }
 0x239   : > { %v721_v2 = vpop.xlane.xlu2 %720 }
 0x23a   : > { %1576 = vrcp.f32 %v721_v2 }
 0x240   : > { %v1577_v4 = vpop.eup %1576 }
 0x241   : > { %v751_v5 = vmul.f32 %v1577_v4, %v721_v2  ;;  %v724_v6 = vpop.xlane.xlu1 %723 }
 0x242   : > { %1578 = vrcp.f32 %v724_v6 }
 0x243   : > { %v759_v7 = vsub.f32 2.0, %v751_v5 }
 0x245   : > { %v767_v8 = vmul.f32 %v1577_v4, %v759_v7 }
 0x247   : > { %v775_v17 = vmul.f32 %v1986_v26, %v767_v8 }
 0x248   : > { %v1579_v18 = vpop.eup %1578 }
 0x249   : > { %v752_v19 = vmul.f32 %v1579_v18, %v724_v6  ;;  %1462 = vmatmul.msk.f32.vlgmr.msra.gmra.mxu3 %vm670_vm1, %v775_v17  ;;  %v727_v20 = vpop.xlane.xlu2 %726 }
 0x24a   : > { %1580 = vrcp.f32 %v727_v20 }
 0x24b   : > { %v760_v21 = vsub.f32 2.0, %v752_v19 }
 0x24d   : > { %v768_v12 = vmul.f32 %v1579_v18, %v760_v21 }
 0x24f   : > { %v776_v23 = vmul.f32 %v1990_v14, %v768_v12 }
 0x250   : > { %v1581_v24 = vpop.eup %1580 }
 0x251   : > { %v753_v25 = vmul.f32 %v1581_v24, %v727_v20  ;;  %v730_v13 = vpop.xlane.xlu0 %729  ;;  %1463 = vmatmul.msk.f32.vlgmr.msrb.gmra.mxu0 %vm670_vm1, %v776_v23 }
 0x252   : > { %1582 = vrcp.f32 %v730_v13 }
 0x253   : > { %v761_v26 = vsub.f32 2.0, %v753_v25 }
 0x255   : > { %v769_v27 = vmul.f32 %v1581_v24, %v761_v26 }
 0x257   : > { %v777_v15 = vmul.f32 %v1994_v33, %v769_v27 }
 0x258   : > { %v1583_v31 = vpop.eup %1582 }
 0x259   : > { %v754_v32 = vmul.f32 %v1583_v31, %v730_v13  ;;  %v733_v14 = vpop.xlane.xlu0 %732  ;;  %1464 = vmatmul.msk.f32.vlgmr.msrb.gmra.mxu1 %vm670_vm1, %v777_v15 }
 0x25a   : > { %1584 = vrcp.f32 %v733_v14 }
 0x25b   : > { %v762_v34 = vsub.f32 2.0, %v754_v32 }
 0x25d   : > { %v770_v35 = vmul.f32 %v1583_v31, %v762_v34 }
 0x25f   : > { %v778_v36 = vmul.f32 %v1998_v38, %v770_v35 }
 0x260   : > { %v1585_v37 = vpop.eup %1584 }
 0x261   : > { %v755_v39 = vmul.f32 %v1585_v37, %v733_v14  ;;  %1465 = vmatmul.msk.f32.vlgmr.msrb.gmra.mxu2 %vm670_vm1, %v778_v36  ;;  %v736_v40 = vpop.xlane.xlu2 %735 }
 0x262   : > { %1586 = vrcp.f32 %v736_v40 }
 0x263   : > { %v763_v41 = vsub.f32 2.0, %v755_v39 }
 0x265   : > { %v771_v33 = vmul.f32 %v1585_v37, %v763_v41 }
 0x267   : > { %v779_v42 = vmul.f32 %v2002_v43, %v771_v33 }
 0x268   : > { %v1587_v44 = vpop.eup %1586 }
 0x269   : > { %v756_v45 = vmul.f32 %v1587_v44, %v736_v40  ;;  %v739_v46 = vpop.xlane.xlu0 %738  ;;  %1466 = vmatmul.msk.f32.vlgmr.msrb.gmra.mxu3 %vm670_vm1, %v779_v42 }
 0x26a   : > { %1588 = vrcp.f32 %v739_v46 }
 0x26b   : > { %v764_v47 = vsub.f32 2.0, %v756_v45 }
 0x26d   : > { %v772_v48 = vmul.f32 %v1587_v44, %v764_v47 }
 0x26f   : > { %v780_v38 = vmul.f32 %v2009_v50, %v772_v48 }
 0x270   : > { %v1589_v49 = vpop.eup %1588 }
 0x271   : > { %v757_v51 = vmul.f32 %v1589_v49, %v739_v46  ;;  %v742_v52 = vpop.xlane.xlu1 %741  ;;  %1467 = vmatmul.msk.f32.vlgmr.msra.gmra.mxu0 %vm670_vm1, %v780_v38 }
 0x272   : > { %1590 = vrcp.f32 %v742_v52 }
 0x273   : > { %v765_v53 = vsub.f32 2.0, %v757_v51  ;;  %1592 = vrcp.f32 %v1780_v10 }
 0x275   : > { %v773_v54 = vmul.f32 %v1589_v49, %v765_v53 }
 0x277   : > { %v781_v43 = vmul.f32 %v2014_v57, %v773_v54 }
 0x278   : > { %v1591_v55 = vpop.eup %1590 }
 0x279   : > { %v758_v56 = vmul.f32 %v1591_v55, %v742_v52  ;;  %1468 = vmatmul.msk.f32.vlgmr.msra.gmra.mxu1 %vm670_vm1, %v781_v43  ;;  %v1593_v11 = vpop.eup %1592 }
 0x27a   : > { %v992_v17 = vmul.f32 32.0, %v1593_v11  ;;  %vm996_vm2 = vweird.f32 %v1593_v11 }
 0x27b   : > { %v766_v16 = vsub.f32 2.0, %v758_v56 }
 0x27c   : > { %v993_v18 = vsub.f32 1.0, %v992_v17 }
 0x27d   : > { %v774_v58 = vmul.f32 %v1591_v55, %v766_v16 }
 0x27e   : > { %v994_v19 = vmul.f32 %v1593_v11, %v993_v18 }
 0x27f   : > { %v782_v59 = vmul.f32 %v2019_v61, %v774_v58 }
 0x280   : > { %v995_v20 = vadd.f32 %v1593_v11, %v994_v19 }
 0x281   : > { %1469 = vmatmul.msk.f32.vlgmr.msra.gmra.mxu2 %vm670_vm1, %v782_v59 }
 0x282   : > { %v2053_v21 = vsel %vm996_vm2, %v1593_v11, %v995_v20 }
 0x2cc   : > { %v803_v50 = vpop.f32.mrf.mxu3 }
 0x2cd   : > { %v967_v60 = vsel %vm354_vm0, %v803_v50, 0.0 }
 0x2ce   : > { %v826_v62 = vpop.f32.mrf.mxu0  ;;  %968 = vadd.xlane.f32.xlu0 %v967_v60 }
 0x2cf   : > { %v970_v63 = vsel %vm354_vm0, %v826_v62, 0.0 }
 0x2d0   : > { %971 = vadd.xlane.f32.xlu1 %v970_v63 }
 0x2d6   : > { %v849_v0 = vpop.f32.mrf.mxu1 }
 0x2d7   : > { %v973_v57 = vsel %vm354_vm0, %v849_v0, 0.0 }
 0x2d8   : > { %974 = vadd.xlane.f32.xlu2 %v973_v57 }
 0x2e4   : > { %v872_v1 = vpop.f32.mrf.mxu2 }
 0x2e5   : > { %v976_v2 = vsel %vm354_vm0, %v872_v1, 0.0 }
 0x2e6   : > { %977 = vadd.xlane.f32.xlu1 %v976_v2 }
 0x2ec   : > { %v895_v3 = vpop.f32.mrf.mxu3 }
 0x2ed   : > { %v979_v61 = vsel %vm354_vm0, %v895_v3, 0.0 }
 0x2ee   : > { %980 = vadd.xlane.f32.xlu2 %v979_v61  ;;  %v918_v4 = vpop.f32.mrf.mxu0 }
 0x2ef   : > { %v982_v5 = vsel %vm354_vm0, %v918_v4, 0.0 }
 0x2f0   : > { %983 = vadd.xlane.f32.xlu0 %v982_v5 }
 0x2f6   : > { %v941_v6 = vpop.f32.mrf.mxu1 }
 0x2f7   : > { %v985_v7 = vsel %vm354_vm0, %v941_v6, 0.0 }
 0x2f8   : > { %986 = vadd.xlane.f32.xlu1 %v985_v7 }
 0x304   : > { %v964_v8 = vpop.f32.mrf.mxu2 }
 0x305   : > { %v988_v9 = vsel %vm354_vm0, %v964_v8, 0.0 }
 0x306   : > { %989 = vadd.xlane.f32.xlu2 %v988_v9 }
 0x341   : > { %v969_v12 = vpop.xlane.xlu0 %968 }
 0x342   : > { %v998_v22 = vmul.f32 %v2053_v21, %v969_v12 }
 0x343   : > { %v972_v23 = vpop.xlane.xlu1 %971 }
 0x344   : > { %v2056_v24 = vsub.f32 %v803_v50, %v998_v22  ;;  %v999_v25 = vmul.f32 %v2053_v21, %v972_v23 }
 0x346   : > { %v2059_v13 = vsub.f32 %v826_v62, %v999_v25  ;;  %v1014_v26 = vmul.f32 %v2056_v24, %v2056_v24 }
 0x348   : > { %v1022_v27 = vsel %vm354_vm0, %v1014_v26, 0.0  ;;  %v1015_v28 = vmul.f32 %v2059_v13, %v2059_v13 }
 0x349   : > { %1023 = vadd.xlane.f32.xlu2 %v1022_v27 }
 0x34a   : > { %v1025_v29 = vsel %vm354_vm0, %v1015_v28, 0.0 }
 0x34b   : > { %1026 = vadd.xlane.f32.xlu0 %v1025_v29  ;;  %v975_v30 = vpop.xlane.xlu2 %974 }
 0x34c   : > { %v1000_v15 = vmul.f32 %v2053_v21, %v975_v30 }
 0x34e   : > { %v2068_v31 = vsub.f32 %v849_v0, %v1000_v15 }
 0x350   : > { %v1016_v32 = vmul.f32 %v2068_v31, %v2068_v31 }
 0x352   : > { %v1028_v14 = vsel %vm354_vm0, %v1016_v32, 0.0 }
 0x353   : > { %1029 = vadd.xlane.f32.xlu1 %v1028_v14 }
 0x359   : > { %v978_v34 = vpop.xlane.xlu1 %977 }
 0x35a   : > { %v1001_v35 = vmul.f32 %v2053_v21, %v978_v34 }
 0x35c   : > { %v2074_v36 = vsub.f32 %v872_v1, %v1001_v35 }
 0x35e   : > { %v1017_v37 = vmul.f32 %v2074_v36, %v2074_v36 }
 0x360   : > { %v1031_v39 = vsel %vm354_vm0, %v1017_v37, 0.0 }
 0x361   : > { %1032 = vadd.xlane.f32.xlu0 %v1031_v39  ;;  %v981_v40 = vpop.xlane.xlu2 %980 }
 0x362   : > { %v1002_v41 = vmul.f32 %v2053_v21, %v981_v40 }
 0x363   : > { %v984_v33 = vpop.xlane.xlu0 %983 }
 0x364   : > { %v2080_v42 = vsub.f32 %v895_v3, %v1002_v41  ;;  %v1003_v44 = vmul.f32 %v2053_v21, %v984_v33 }
 0x366   : > { %v2083_v45 = vsub.f32 %v918_v4, %v1003_v44  ;;  %v1018_v46 = vmul.f32 %v2080_v42, %v2080_v42 }
 0x368   : > { %v1034_v47 = vsel %vm354_vm0, %v1018_v46, 0.0  ;;  %v1019_v48 = vmul.f32 %v2083_v45, %v2083_v45 }
 0x369   : > { %1035 = vadd.xlane.f32.xlu1 %v1034_v47 }
 0x36a   : > { %v1037_v38 = vsel %vm354_vm0, %v1019_v48, 0.0 }
 0x36b   : > { %v987_v49 = vpop.xlane.xlu1 %986  ;;  %1038 = vadd.xlane.f32.xlu2 %v1037_v38 }
 0x36c   : > { %v1004_v51 = vmul.f32 %v2053_v21, %v987_v49 }
 0x36e   : > { %v2092_v52 = vsub.f32 %v941_v6, %v1004_v51 }
 0x370   : > { %v1020_v53 = vmul.f32 %v2092_v52, %v2092_v52 }
 0x372   : > { %v1040_v54 = vsel %vm354_vm0, %v1020_v53, 0.0 }
 0x373   : > { %1041 = vadd.xlane.f32.xlu0 %v1040_v54 }
 0x379   : > { %v990_v43 = vpop.xlane.xlu2 %989 }
 0x37a   : > { %v1005_v55 = vmul.f32 %v2053_v21, %v990_v43 }
 0x37c   : > { %v2098_v56 = vsub.f32 %v964_v8, %v1005_v55 }
 0x37e   : > { %v1021_v16 = vmul.f32 %v2098_v56, %v2098_v56 }
 0x380   : > { %v1043_v58 = vsel %vm354_vm0, %v1021_v16, 0.0 }
 0x381   : > { %1044 = vadd.xlane.f32.xlu1 %v1043_v58 }
 0x3bc   : > { %v1024_v60 = vpop.xlane.xlu2 %1023 }
 0x3bd   : > { %v1046_v57 = vmul.f32 %v1024_v60, %v2053_v21 }
 0x3be   : > { %v1027_v59 = vpop.xlane.xlu0 %1026 }
 0x3bf   : > { %v1047_v50 = vmul.f32 %v1027_v59, %v2053_v21  ;;  %v2106_v2 = vadd.f32 1e-05, %v1046_v57 }
 0x3c1   : > { %v1055_v63 = vadd.f32 1e-05, %v1047_v50  ;;  %vm1068_vm13 = vweird.f32 %v2106_v2 }
 0x3c3   : > { %1594 = vrsqrt.f32 %v1055_v63  ;;  %vm1078_vm5 = vweird.f32 %v1055_v63 }
 0x3c6   : > { %v1030_v62 = vpop.xlane.xlu1 %1029 }
 0x3c7   : > { %v1048_v0 = vmul.f32 %v1030_v62, %v2053_v21 }
 0x3c9   : > { %v1056_v1 = vadd.f32 1e-05, %v1048_v0  ;;  %v1595_v3 = vpop.eup %1594 }
 0x3ca   : > { %v1073_v4 = vmul.f32 %v1595_v3, %v1055_v63  ;;  %vm1079_vm3 = vweird.f32 %v1595_v3 }
 0x3cb   : > { %1596 = vrsqrt.f32 %v1056_v1  ;;  %vm2120_vm7 = vmor %vm1078_vm5, %vm1079_vm3  ;;  %vm1088_vm8 = vweird.f32 %v1056_v1 }
 0x3cc   : > { %1598 = vrsqrt.f32 %v2106_v2  ;;  %v1074_v10 = vmul.f32 %v1595_v3, %v1073_v4 }
 0x3ce   : > { %v1075_v18 = vmul.f32 0.5, %v1074_v10 }
 0x3d0   : > { %v1076_v28 = vsub.f32 1.5, %v1075_v18 }
 0x3d1   : > { %v1597_v61 = vpop.eup %1596 }
 0x3d2   : > { %v1083_v6 = vmul.f32 %v1597_v61, %v1056_v1  ;;  %v2110_v8 = vpop.eup %1598  ;;  %v1077_v34 = vmul.f32 %v1595_v3, %v1076_v28  ;;  %vm1089_vm4 = vweird.f32 %v1597_v61  ;;  %v1781_v1 = vmov 8.0  }
 0x3d3   : > { %v1063_v11 = vmul.f32 %v2110_v8, %v2106_v2  ;;  %vm2127_vm9 = vmor %vm1088_vm8, %vm1089_vm4  ;;  %vm1069_vm11 = vweird.f32 %v2110_v8 }
 0x3d4   : > { %v1033_v5 = vpop.xlane.xlu0 %1032  ;;  %v1084_v17 = vmul.f32 %v1597_v61, %v1083_v6  ;;  %v1081_v47 = vsel %vm2120_vm7, %v1595_v3, %v1077_v34  ;;  %vm1070_vm14 = vmor %vm1068_vm13, %vm1069_vm11  ;;  %vm1254_vm13 = vcmask 1041409  }
 0x3d5   : > { %v1049_v7 = vmul.f32 %v1033_v5, %v2053_v21  ;;  %v1064_v20 = vmul.f32 %v2110_v8, %v1063_v11  ;;  %v1143_v58 = vmul.f32 %v1081_v47, %v2059_v13 }
 0x3d6   : > { %v1085_v12 = vmul.f32 0.5, %v1084_v17 }
 0x3d7   : > { %v1057_v9 = vadd.f32 1e-05, %v1049_v7  ;;  %v1065_v30 = vmul.f32 0.5, %v1064_v20  ;;  %v1157_v2 = vsel %vm354_vm0, %v1143_v58, 0.0 }
 0x3d8   : > { %v1086_v15 = vsub.f32 1.5, %v1085_v12 }
 0x3d9   : > { %1600 = vrsqrt.f32 %v1057_v9  ;;  %v1066_v37 = vsub.f32 1.5, %v1065_v30  ;;  %vm1098_vm10 = vweird.f32 %v1057_v9 }
 0x3da   : > { %v1087_v39 = vmul.f32 %v1597_v61, %v1086_v15 }
 0x3db   : > { %v1067_v53 = vmul.f32 %v2110_v8, %v1066_v37 }
 0x3dc   : > { %v1036_v19 = vpop.xlane.xlu1 %1035  ;;  %v1091_v54 = vsel %vm2127_vm9, %v1597_v61, %v1087_v39 }
 0x3dd   : > { %v1050_v22 = vmul.f32 %v1036_v19, %v2053_v21  ;;  %v1144_v50 = vmul.f32 %v1091_v54, %v2068_v31  ;;  %v1071_v62 = vsel %vm1070_vm14, %v2110_v8, %v1067_v53  ;;  %vm1257_vm14 = vcmask 1042434  }
 0x3de   : > { %v1039_v23 = vpop.xlane.xlu2 %1038  ;;  %v1142_v3 = vmul.f32 %v1071_v62, %v2056_v24 }
 0x3df   : > { %v1601_v25 = vpop.eup %1600  ;;  %v1058_v26 = vadd.f32 1e-05, %v1050_v22  ;;  %v1051_v27 = vmul.f32 %v1039_v23, %v2053_v21  ;;  %v1164_v61 = vsel %vm354_vm0, %v1144_v50, 0.0 }
 0x3e0   : > { %v1093_v29 = vmul.f32 %v1601_v25, %v1057_v9  ;;  %vm1099_vm6 = vweird.f32 %v1601_v25  ;;  %v1165_v9 = vrot.slane %v1164_v61, 4  ;;  %v1150_v24 = vsel %vm354_vm0, %v1142_v3, 0.0 }
 0x3e1   : > { %1602 = vrsqrt.f32 %v1058_v26  ;;  %v2117_v32 = vadd.f32 1e-05, %v1051_v27  ;;  %vm1100_vm12 = vmor %vm1098_vm10, %vm1099_vm6  ;;  %vm1108_vm1 = vweird.f32 %v1058_v26  ;;  %v1151_v28 = vrot.slane %v1150_v24, 4 }
 0x3e2   : > { %v1094_v14 = vmul.f32 %v1601_v25, %v1093_v29  ;;  %v1166_v29 = vadd.f32 %v1165_v9, %v1164_v61 }
 0x3e3   : > { %1604 = vrsqrt.f32 %v2117_v32  ;;  %vm1118_vm4 = vweird.f32 %v2117_v32 }
 0x3e4   : > { %v1095_v35 = vmul.f32 0.5, %v1094_v14 }
 0x3e6   : > { %v1096_v40 = vsub.f32 1.5, %v1095_v35  ;;  %v1042_v41 = vpop.xlane.xlu0 %1041 }
 0x3e7   : > { %v1603_v33 = vpop.eup %1602  ;;  %v1052_v46 = vmul.f32 %v1042_v41, %v2053_v21 }
 0x3e8   : > { %v1097_v38 = vmul.f32 %v1601_v25, %v1096_v40  ;;  %v1103_v49 = vmul.f32 %v1603_v33, %v1058_v26  ;;  %vm1109_vm15 = vweird.f32 %v1603_v33  ;;  %v1152_v40 = vadd.f32 %v1151_v28, %v1150_v24 }
 0x3e9   : > { %v1605_v51 = vpop.eup %1604  ;;  %v2136_v43 = vadd.f32 1e-05, %v1052_v46  ;;  %vm1110_vm2 = vmor %vm1108_vm1, %vm1109_vm15  ;;  %vm1260_vm15 = vcmask 1043459   ;;  %vm1263_vm1 = vcmask 1044484  }
 0x3ea   : > { %v1101_v55 = vsel %vm1100_vm12, %v1601_v25, %v1097_v38  ;;  %v1104_v16 = vmul.f32 %v1603_v33, %v1103_v49  ;;  %v1113_v59 = vmul.f32 %v1605_v51, %v2117_v32  ;;  %vm1119_vm3 = vweird.f32 %v1605_v51 }
 0x3eb   : > { %1606 = vrsqrt.f32 %v2136_v43  ;;  %v1145_v63 = vmul.f32 %v1101_v55, %v2074_v36  ;;  %v1158_v36 = vrot.slane %v1157_v2, 4  ;;  %vm1120_vm5 = vmor %vm1118_vm4, %vm1119_vm3  ;;  %vm1128_vm7 = vweird.f32 %v2136_v43 }
 0x3ec   : > { %v1105_v60 = vmul.f32 0.5, %v1104_v16  ;;  %v1114_v0 = vmul.f32 %v1605_v51, %v1113_v59  ;;  %1608 = vrcp.f32 %v1781_v1  ;;  %vm1269_vm3 = vcmask 1046534  }
 0x3ed   : > { %v1171_v5 = vsel %vm354_vm0, %v1145_v63, 0.0  ;;  %v1159_v25 = vadd.f32 %v1158_v36, %v1157_v2  ;;  %vm1272_vm4 = vcmask 1047559  }
 0x3ee   : > { %v1106_v57 = vsub.f32 1.5, %v1105_v60  ;;  %v1115_v13 = vmul.f32 0.5, %v1114_v0  ;;  %v1172_v17 = vrot.slane %v1171_v5, 4 }
 0x3ef   : > { %v1160_v39 = vrot.slane %v1159_v25, 2 }
 0x3f0   : > { %v1107_v4 = vmul.f32 %v1603_v33, %v1106_v57  ;;  %v1116_v6 = vsub.f32 1.5, %v1115_v13  ;;  %v1173_v15 = vadd.f32 %v1172_v17, %v1171_v5 }
 0x3f1   : > { %v1607_v31 = vpop.eup %1606  ;;  %v1161_v38 = vadd.f32 %v1160_v39, %v1159_v25 }
 0x3f2   : > { %v1111_v7 = vsel %vm1110_vm2, %v1603_v33, %v1107_v4  ;;  %v1123_v8 = vmul.f32 %v1607_v31, %v2136_v43  ;;  %v1117_v11 = vmul.f32 %v1605_v51, %v1116_v6  ;;  %v2153_v20 = vpop.eup %1608  ;;  %vm1129_vm6 = vweird.f32 %v1607_v31 }
 0x3f3   : > { %v1146_v10 = vmul.f32 %v1111_v7, %v2080_v42  ;;  %v1207_v34 = vmul.f32 8.0, %v2153_v20  ;;  %vm1130_vm8 = vmor %vm1128_vm7, %vm1129_vm6  ;;  %v1174_v41 = vrot.slane %v1173_v15, 2  ;;  %v1162_v60 = vrot.slane %v1161_v38, 1 }
 0x3f4   : > { %v1124_v18 = vmul.f32 %v1607_v31, %v1123_v8  ;;  %v1045_v19 = vpop.xlane.xlu1 %1044  ;;  %v1121_v22 = vsel %vm1120_vm5, %v1605_v51, %v1117_v11  ;;  %v1153_v51 = vrot.slane %v1152_v40, 2  ;;  %vm1211_vm9 = vweird.f32 %v2153_v20 }
 0x3f5   : > { %v1178_v12 = vsel %vm354_vm0, %v1146_v10, 0.0  ;;  %v1053_v23 = vmul.f32 %v1045_v19, %v2053_v21  ;;  %v1147_v42 = vmul.f32 %v1121_v22, %v2083_v45  ;;  %v1167_v45 = vrot.slane %v1166_v29, 2  ;;  %v1558_v22 = vld [vmem:[%s2213_s3] ss:$0 sm:$0xff] }
 0x3f6   : > { %v1179_v26 = vrot.slane %v1178_v12, 4  ;;  %v1125_v27 = vmul.f32 0.5, %v1124_v18  ;;  %v1208_v46 = vsub.f32 1.0, %v1207_v34  ;;  %v1175_v55 = vadd.f32 %v1174_v41, %v1173_v15  ;;  %v1559_v15 = vld [vmem:[%s2214_s4] ss:$0 sm:$0xff] }
 0x3f7   : > { %v1061_v30 = vadd.f32 1e-05, %v1053_v23  ;;  %v1185_v32 = vsel %vm354_vm0, %v1147_v42, 0.0  ;;  %v1168_v53 = vadd.f32 %v1167_v45, %v1166_v29  ;;  %v1154_v0 = vadd.f32 %v1153_v51, %v1152_v40 }
 0x3f8   : > { %v1126_v14 = vsub.f32 1.5, %v1125_v27  ;;  %v1180_v35 = vadd.f32 %v1179_v26, %v1178_v12  ;;  %v1186_v37 = vrot.slane %v1185_v32, 4  ;;  %v1209_v59 = vmul.f32 %v2153_v20, %v1208_v46 }
 0x3f9   : > { %1610 = vrsqrt.f32 %v1061_v30  ;;  %v1169_v57 = vrot.slane %v1168_v53, 1  ;;  %v1176_v1 = vrot.slane %v1175_v55, 1  ;;  %v1163_v4 = vadd.f32 %v1162_v60, %v1161_v38 }
 0x3fa   : > { %v1127_v21 = vmul.f32 %v1607_v31, %v1126_v14  ;;  %v1187_v33 = vadd.f32 %v1186_v37, %v1185_v32  ;;  %v1181_v47 = vrot.slane %v1180_v35, 2  ;;  %v1210_v3 = vadd.f32 %v2153_v20, %v1209_v59 }
 0x3fb   : > { %v1155_v6 = vrot.slane %v1154_v0, 1  ;;  %v1170_v36 = vadd.f32 %v1169_v57, %v1168_v53  ;;  %v1177_v7 = vadd.f32 %v1176_v1, %v1175_v55  ;;  %vm1138_vm11 = vweird.f32 %v1061_v30 }
 0x3fc   : > { %v1131_v44 = vsel %vm1130_vm8, %v1607_v31, %v1127_v21  ;;  %v1188_v16 = vrot.slane %v1187_v33, 2  ;;  %v1182_v50 = vadd.f32 %v1181_v47, %v1180_v35  ;;  %v1212_v10 = vsel %vm1211_vm9, %v2153_v20, %v1210_v3 }
 0x3fd   : > { %v1148_v48 = vmul.f32 %v1131_v44, %v2092_v52  ;;  %v1214_v17 = vmul.f32 %v1212_v10, %v1163_v4  ;;  %v1215_v19 = vmul.f32 %v1212_v10, %v1170_v36  ;;  %v1156_v23 = vadd.f32 %v1155_v6, %v1154_v0 }
 0x3fe   : > { %v1189_v52 = vadd.f32 %v1188_v16, %v1187_v33  ;;  %v1183_v61 = vrot.slane %v1182_v50, 1  ;;  %v1216_v25 = vmul.f32 %v1212_v10, %v1177_v7  ;;  %vm1266_vm2 = vcmask 1045509  }
 0x3ff   : > { %v1611_v49 = vpop.eup %1610  ;;  %v1192_v54 = vsel %vm354_vm0, %v1148_v48, 0.0  ;;  %v1226_v20 = vmul.f32 %v1558_v22, %v1214_v17  ;;  %v1213_v32 = vmul.f32 %v1212_v10, %v1156_v23 }
 0x400   : > { %v1193_v58 = vrot.slane %v1192_v54, 4  ;;  %v1133_v43 = vmul.f32 %v1611_v49, %v1061_v30  ;;  %vm1139_vm10 = vweird.f32 %v1611_v49  ;;  %v1190_v8 = vrot.slane %v1189_v52, 1 }
 0x401   : > { %v1184_v11 = vadd.f32 %v1183_v61, %v1182_v50  ;;  %vm1140_vm12 = vmor %vm1138_vm11, %vm1139_vm10  ;;  %v1227_v30 = vmul.f32 %v1558_v22, %v1215_v19  ;;  %v1238_v39 = vadd.f32 %v1559_v15, %v1226_v20  ;;  %v1225_v45 = vmul.f32 %v1558_v22, %v1213_v32 }
 0x402   : > { %v1194_v62 = vadd.f32 %v1193_v58, %v1192_v54  ;;  %v1134_v63 = vmul.f32 %v1611_v49, %v1133_v43  ;;  %v1191_v26 = vadd.f32 %v1190_v8, %v1189_v52 }
 0x403   : > { %v1217_v42 = vmul.f32 %v1212_v10, %v1184_v11  ;;  %v1239_v40 = vadd.f32 %v1559_v15, %v1227_v30  ;;  %v1253_v48 = vrot.slane %v1238_v39, 7  ;;  %v1237_v51 = vadd.f32 %v1559_v15, %v1225_v45 }
 0x404   : > { %v1195_v2 = vrot.slane %v1194_v62, 2  ;;  %v1135_v13 = vmul.f32 0.5, %v1134_v63  ;;  %v1218_v14 = vmul.f32 %v1212_v10, %v1191_v26 }
 0x405   : > { %v1229_v35 = vmul.f32 %v1558_v22, %v1217_v42  ;;  %v1255_v59 = vsel %vm1254_vm13, %v1253_v48, %v1237_v51 }
 0x406   : > { %v1196_v31 = vadd.f32 %v1195_v2, %v1194_v62  ;;  %v1136_v5 = vsub.f32 1.5, %v1135_v13  ;;  %v1230_v33 = vmul.f32 %v1558_v22, %v1218_v14 }
 0x407   : > { %v1241_v47 = vadd.f32 %v1559_v15, %v1229_v35 }
 0x408   : > { %v1137_v9 = vmul.f32 %v1611_v49, %v1136_v5  ;;  %v1197_v24 = vrot.slane %v1196_v31, 1  ;;  %v1242_v54 = vadd.f32 %v1559_v15, %v1230_v33 }
 0x409   : > { %v1262_v58 = vrot.slane %v1241_v47, 4 }
 0x40a   : > { %v1141_v18 = vsel %vm1140_vm12, %v1611_v49, %v1137_v9  ;;  %v1198_v27 = vadd.f32 %v1197_v24, %v1196_v31  ;;  %v1256_v49 = vrot.slane %v1239_v40, 6  ;;  %v1265_v63 = vrot.slane %v1242_v54, 3 }
 0x40b   : > { %v1149_v12 = vmul.f32 %v1141_v18, %v2098_v56  ;;  %v1228_v56 = vmul.f32 %v1558_v22, %v1216_v25 }
 0x40c   : > { %v1219_v37 = vmul.f32 %v1212_v10, %v1198_v27  ;;  %v1258_v50 = vsel %vm1257_vm14, %v1256_v49, %v1255_v59 }
 0x40d   : > { %v1199_v28 = vsel %vm354_vm0, %v1149_v12, 0.0  ;;  %v1240_v41 = vadd.f32 %v1559_v15, %v1228_v56 }
 0x40e   : > { %v1200_v29 = vrot.slane %v1199_v28, 4  ;;  %v1231_v46 = vmul.f32 %v1558_v22, %v1219_v37 }
 0x40f   : > { %v1259_v55 = vrot.slane %v1240_v41, 5 }
 0x410   : > { %v1201_v34 = vadd.f32 %v1200_v29, %v1199_v28  ;;  %v1243_v16 = vadd.f32 %v1559_v15, %v1231_v46 }
 0x411   : > { %v1261_v62 = vsel %vm1260_vm15, %v1259_v55, %v1258_v50 }
 0x412   : > { %v1202_v21 = vrot.slane %v1201_v34, 2  ;;  %v1264_v0 = vsel %vm1263_vm1, %v1262_v58, %v1261_v62  ;;  %v1268_v57 = vrot.slane %v1243_v16, 2 }
 0x413   : > { %v1267_v52 = vsel %vm1266_vm2, %v1265_v63, %v1264_v0 }
 0x414   : > { %v1203_v44 = vadd.f32 %v1202_v21, %v1201_v34  ;;  %v1270_v13 = vsel %vm1269_vm3, %v1268_v57, %v1267_v52 }
 0x416   : > { %v1204_v38 = vrot.slane %v1203_v44, 1 }
 0x418   : > { %v1205_v53 = vadd.f32 %v1204_v38, %v1203_v44 }
 0x41a   : > { %v1220_v43 = vmul.f32 %v1212_v10, %v1205_v53 }
 0x41c   : > { %v1232_v60 = vmul.f32 %v1558_v22, %v1220_v43 }
 0x41e   : > { %v1244_v1 = vadd.f32 %v1559_v15, %v1232_v60 }
 0x420   : > { %v1271_v2 = vrot.slane %v1244_v1, 1 }
 0x422   : > { %v1273_v3 = vsel %vm1272_vm4, %v1271_v2, %v1270_v13 }
 0x423   : > { %1275 = vst.msk [vmem:[%s275_s22] sm:$0xff] %vm354_vm0, %v1273_v3 }
 0x424   : > { %1729 = shalt.err (!%p1726_p10)
}
 0x425   : > { %1495 = dma.vmem_to_hbm [thread:$0]  (%p1878_p3), %s1290_s6, 128, %s1292_s26, %s1277_s7  }
 0x426 PF: > { %s1303_s8 = sand.u32 1, %s1760_s18   ;;  %p2225_p12 = scmp.ge.s32.totalorder %s1772_s21, 2 }
 0x427   : > { %s1304_s11 = scalar_lea.sflag [#allocation4], %s1303_s8 }
 0x428   : > { %p1509_p13 = pnand %p2225_p12, %p1847_p6 }
 0x42a   : > { %p1510_p0 = pneg %p1509_p13 }
 0x42c   : > { %1755 = dma.done.wait (%p1510_p0), %s1304_s11, 128  }
 0x42d   : > { %1757 = vsyncadd (%p1510_p0), %s1304_s11, 4294967168  ;;  %p19_p5 = scmp.ge.s32.totalorder %s1868_s14, 4   ;;  %s2226_s18 = smov %s1764_s19 }
 0x42e   : > { %s2227_s19 = smov %s1768_s20  ;;  %s2228_s20 = smov %s1884_s23 }
 0x42f   : > { %s2229_s21 = smov %s1868_s14  ;;  %21 = sbr.rel (!%p19_p5) target bundleno = 6 (0x6), region = 93 }
 0x434   :  { %1310 = vsyncpa [#allocation3], 1 }
 0x435   :  { %1312 = vsyncpa [#allocation3 + $0x1], 1 }
 0x436   :  { %1313 = vsyncpa [#allocation6], 1 }
 0x437   :  { %1314 = vsyncpa [#allocation4], 1 }
 0x438   :  { %1316 = vsyncpa [#allocation4 + $0x1], 1 }

</bundles_post_ra>
